<compile_context>
chip_gen: v5e
topology: v5e:2x2
jax: 0.10.0
libtpu: 0.0.40
codegen_flags: <defaults>
</compile_context>

<pallas_src>
import functools

import jax
import jax.numpy as jnp
from jax import lax
from jax.experimental import pallas as pl
from jax.experimental.pallas import tpu as pltpu


_DROP_P1 = 0.3
_DROP_P2 = 0.5


def _drop_threshold(p):
    """uint32 threshold t such that P(bits >= t) == 1 - p for uniform bits."""
    return jnp.uint32(min(int(p * (1 << 32)), (1 << 32) - 1))


def _hash_bits_u32(shape, row_offset, seed_u32):
    """Counter-based uniform uint32 bits (murmur3-style finalizer) keyed on
    (seed, global row, col).  Pure elementwise VPU ops -> lowers on Mosaic TPU
    and in interpret mode (unlike pltpu.prng_*)."""
    rows = (lax.broadcasted_iota(jnp.int32, shape, 0) + row_offset).astype(jnp.uint32)
    cols = lax.broadcasted_iota(jnp.int32, shape, 1).astype(jnp.uint32)
    x = seed_u32 * jnp.uint32(0x9E3779B1)
    x = x + rows * jnp.uint32(0x85EBCA77) + cols * jnp.uint32(0xC2B2AE3D)
    x = x ^ (x >> 16)
    x = x * jnp.uint32(0x7FEB352D)
    x = x ^ (x >> 15)
    x = x * jnp.uint32(0x846CA68B)
    x = x ^ (x >> 16)
    return x


def mcd_kernel(seed_ref, x_ref, w1_ref, b1_ref, w2_ref, b2_ref, w3_ref, b3_ref,
               out_ref, *, training):
    tile_b = x_ref.shape[0]
    h1_dim = w1_ref.shape[1]
    h2_dim = w2_ref.shape[1]

    # fc1 + ReLU (bf16 operands, f32 MXU accumulation)
    h1 = jnp.dot(x_ref[...], w1_ref[...], preferred_element_type=jnp.float32)
    h1 = jnp.maximum(h1 + b1_ref[...], 0.0)

    if training:
        # One lane-dense random block (>=128 lanes) covers both dropout masks.
        nbits = max(128, -(-(h1_dim + h2_dim) // 128) * 128)
        row0 = pl.program_id(0) * tile_b  # global row offset -> per-tile masks
        bits = _hash_bits_u32((tile_b, nbits), row0, seed_ref[0].astype(jnp.uint32))
        keep1 = bits[:, :h1_dim] >= _drop_threshold(_DROP_P1)
        h1 = jnp.where(keep1, h1 * (1.0 / (1.0 - _DROP_P1)), 0.0)

    # fc2 + ReLU
    h2 = jnp.dot(h1.astype(jnp.bfloat16), w2_ref[...],
                 preferred_element_type=jnp.float32)
    h2 = jnp.maximum(h2 + b2_ref[...], 0.0)

    if training:
        keep2 = bits[:, h1_dim:h1_dim + h2_dim] >= _drop_threshold(_DROP_P2)
        h2 = jnp.where(keep2, h2 * (1.0 / (1.0 - _DROP_P2)), 0.0)

    # fc3 (out last-dim is tiny -> masked stores; output bytes are negligible)
    out = jnp.dot(h2.astype(jnp.bfloat16), w3_ref[...],
                  preferred_element_type=jnp.float32)
    out_ref[...] = (out + b3_ref[...]).astype(out_ref.dtype)


def mc_dropout_forward(x, params, seed, *, training=True, tile_b=2048):
    """Fused forward pass. x: (B, input_dim) f32; weights pre-transposed (in, out)."""
    w1, b1, w2, b2, w3, b3 = params
    B, in_dim = x.shape
    h1_dim, h2_dim, out_dim = w1.shape[1], w2.shape[1], w3.shape[1]

    # bf16 at the HBM boundary halves x/weight traffic; accumulation stays f32.
    x_bf = x.astype(jnp.bfloat16)
    w1b = w1.astype(jnp.bfloat16)
    w2b = w2.astype(jnp.bfloat16)
    w3b = w3.astype(jnp.bfloat16)

    tb = B if B <= tile_b else tile_b            # tile_b is a multiple of 8
    grid = (pl.cdiv(B, tb),)
    seed_arr = jnp.asarray([seed], dtype=jnp.int32)

    grid_spec = pltpu.PrefetchScalarGridSpec(
        num_scalar_prefetch=1,                   # seed -> SMEM, zero DMA cost
        grid=grid,
        in_specs=[
            pl.BlockSpec((tb, in_dim), lambda i, s: (i, 0)),       # x tile (pipelined)
            pl.BlockSpec((in_dim, h1_dim), lambda i, s: (0, 0)),   # w1 (VMEM-resident)
            pl.BlockSpec((1, h1_dim), lambda i, s: (0, 0)),        # b1
            pl.BlockSpec((h1_dim, h2_dim), lambda i, s: (0, 0)),   # w2
            pl.BlockSpec((1, h2_dim), lambda i, s: (0, 0)),        # b2
            pl.BlockSpec((h2_dim, out_dim), lambda i, s: (0, 0)),  # w3
            pl.BlockSpec((1, out_dim), lambda i, s: (0, 0)),       # b3
        ],
        out_specs=pl.BlockSpec((tb, out_dim), lambda i, s: (i, 0)),
    )

    # Only attach Mosaic compiler params when actually compiling for TPU.
    compiler_params = None
    if jax.default_backend() == "tpu":
        compiler_params = pltpu.CompilerParams(
            dimension_semantics=("parallel",),      # v7x: shard tiles over 2 TCs
            vmem_limit_bytes=32 * 1024 * 1024,      # safe on v5e/v6e/v7x; tiles are tiny
        )

    return pl.pallas_call(
        functools.partial(mcd_kernel, training=training),
        out_shape=jax.ShapeDtypeStruct((B, out_dim), jnp.float32),
        grid_spec=grid_spec,
        compiler_params=compiler_params,
    )(seed_arr, x_bf, w1b, b1, w2b, b2, w3b, b3)


def init_params(key, input_dim, output_dim, hidden_dim1=64, hidden_dim2=32):
    """nn.Linear-style init U(-1/sqrt(in), 1/sqrt(in)); weights stored (in, out)."""
    def linear(k, fan_in, fan_out):
        kw, kb = jax.random.split(k)
        lim = 1.0 / jnp.sqrt(fan_in)
        w = jax.random.uniform(kw, (fan_in, fan_out), jnp.float32, -lim, lim)
        b = jax.random.uniform(kb, (1, fan_out), jnp.float32, -lim, lim)
        return w, b

    k1, k2, k3 = jax.random.split(key, 3)
    w1, b1 = linear(k1, input_dim, hidden_dim1)
    w2, b2 = linear(k2, hidden_dim1, hidden_dim2)
    w3, b3 = linear(k3, hidden_dim2, output_dim)
    return (w1, b1, w2, b2, w3, b3)


def _reference_eval(x, params):
    """Pure-JAX eval-mode reference mirroring the kernel's bf16 casts."""
    w1, b1, w2, b2, w3, b3 = params
    bf = lambda a: a.astype(jnp.bfloat16).astype(jnp.float32)
    h1 = jnp.maximum(jnp.dot(bf(x), bf(w1)) + b1, 0.0)
    h2 = jnp.maximum(jnp.dot(bf(h1), bf(w2)) + b2, 0.0)
    return jnp.dot(bf(h2), bf(w3)) + b3


if __name__ == "__main__":
    key = jax.random.PRNGKey(0)
    k_x, k_x2, k_p = jax.random.split(key, 3)

    input_dim, output_dim = 16, 4
    params = init_params(k_p, input_dim, output_dim)

    # Single-tile eval-mode check (B = 8, grid of 1).
    x = jax.random.normal(k_x, (8, input_dim), jnp.float32)
    y_eval = jax.block_until_ready(
        mc_dropout_forward(x, params, seed=0, training=False))
    y_ref = _reference_eval(x, params)
    assert jnp.allclose(y_eval, y_ref, atol=2e-2, rtol=2e-2), "eval mismatch (B=8)"

    # Gridded eval-mode check (B = 48, TILE_B = 16 -> grid of 3, resident weights).
    x2 = jax.random.normal(k_x2, (48, input_dim), jnp.float32)
    y2 = jax.block_until_ready(
        mc_dropout_forward(x2, params, seed=0, training=False, tile_b=16))
    y2_ref = _reference_eval(x2, params)
    assert jnp.allclose(y2, y2_ref, atol=2e-2, rtol=2e-2), "eval mismatch (gridded)"

    # Training-mode (MC-dropout) path: right shape, finite, seed-deterministic,
    # and actually different from the eval path (dropout active).
    y_tr_a = jax.block_until_ready(
        mc_dropout_forward(x, params, seed=1234, training=True))
    y_tr_b = jax.block_until_ready(
        mc_dropout_forward(x, params, seed=1234, training=True))
    assert y_tr_a.shape == (8, output_dim)
    assert bool(jnp.all(jnp.isfinite(y_tr_a)))
    assert jnp.allclose(y_tr_a, y_tr_b), "dropout not deterministic for fixed seed"
    assert not jnp.allclose(y_tr_a, y_eval, atol=1e-6), "dropout appears inactive"

    # TODO(synk): MCD_pred / train_model / query are host-side driver loops
    # (sampling, AdamW training, argsort selection) and are not kernels.

    print("KERNEL_OK")
</pallas_src>

<mosaic_0001>
module attributes {stable_mosaic.version = 11 : i64} {
  func.func @mcd_kernel(%arg0: i32, %arg1: memref<1xi32, #tpu.memory_space<smem>>, %arg2: memref<8x16xbf16, #tpu.memory_space<vmem>>, %arg3: memref<16x64xbf16, #tpu.memory_space<vmem>>, %arg4: memref<1x64xf32, #tpu.memory_space<vmem>>, %arg5: memref<64x32xbf16, #tpu.memory_space<vmem>>, %arg6: memref<1x32xf32, #tpu.memory_space<vmem>>, %arg7: memref<32x4xbf16, #tpu.memory_space<vmem>>, %arg8: memref<1x4xf32, #tpu.memory_space<vmem>>, %arg9: memref<8x4xf32, #tpu.memory_space<vmem>>) attributes {dimension_semantics = [#tpu.dimension_semantics<arbitrary>], iteration_bounds = array<i64: 1>, scalar_prefetch = 1 : i64, scratch_operands = 0 : i64, tpu.core_type = #tpu.core_type<tc>, window_params = [{transform_indices = @transform_0, window_bounds = array<i64: 8, 16>}, {pipeline_mode = #tpu.pipeline_mode<synchronous>, transform_indices = @transform_1, window_bounds = array<i64: 16, 64>}, {pipeline_mode = #tpu.pipeline_mode<synchronous>, transform_indices = @transform_2, window_bounds = array<i64: 1, 64>}, {pipeline_mode = #tpu.pipeline_mode<synchronous>, transform_indices = @transform_3, window_bounds = array<i64: 64, 32>}, {pipeline_mode = #tpu.pipeline_mode<synchronous>, transform_indices = @transform_4, window_bounds = array<i64: 1, 32>}, {pipeline_mode = #tpu.pipeline_mode<synchronous>, transform_indices = @transform_5, window_bounds = array<i64: 32, 4>}, {pipeline_mode = #tpu.pipeline_mode<synchronous>, transform_indices = @transform_6, window_bounds = array<i64: 1, 4>}, {transform_indices = @transform_7, window_bounds = array<i64: 8, 4>}]} {
    %c0 = arith.constant 0 : index
    %c0_0 = arith.constant 0 : index
    %0 = vector.load %arg2[%c0, %c0_0] : memref<8x16xbf16, #tpu.memory_space<vmem>>, vector<8x16xbf16>
    %c0_1 = arith.constant 0 : index
    %c0_2 = arith.constant 0 : index
    %1 = vector.load %arg3[%c0_1, %c0_2] : memref<16x64xbf16, #tpu.memory_space<vmem>>, vector<16x64xbf16>
    %cst = arith.constant dense<0.000000e+00> : vector<8x64xf32>
    %2 = tpu.matmul %0, %1, %cst {dimension_numbers = #tpu.dot_dimension_numbers<[1], [0], [0], [1], [0, 0, 1, 1], [], []>} : vector<8x16xbf16>, vector<16x64xbf16>, vector<8x64xf32> -> vector<8x64xf32>
    %c0_3 = arith.constant 0 : index
    %c0_4 = arith.constant 0 : index
    %3 = vector.load %arg4[%c0_3, %c0_4] : memref<1x64xf32, #tpu.memory_space<vmem>>, vector<1x64xf32>
    %4 = vector.broadcast %3 : vector<1x64xf32> to vector<8x64xf32>
    %5 = arith.addf %2, %4 : vector<8x64xf32>
    %cst_5 = arith.constant 0.000000e+00 : f32
    %6 = vector.broadcast %cst_5 : f32 to vector<8x64xf32>
    %7 = arith.maximumf %5, %6 : vector<8x64xf32>
    %8 = arith.truncf %7 : vector<8x64xf32> to vector<8x64xbf16>
    %c0_6 = arith.constant 0 : index
    %c0_7 = arith.constant 0 : index
    %9 = vector.load %arg5[%c0_6, %c0_7] : memref<64x32xbf16, #tpu.memory_space<vmem>>, vector<64x32xbf16>
    %cst_8 = arith.constant dense<0.000000e+00> : vector<8x32xf32>
    %10 = tpu.matmul %8, %9, %cst_8 {dimension_numbers = #tpu.dot_dimension_numbers<[1], [0], [0], [1], [0, 0, 1, 1], [], []>} : vector<8x64xbf16>, vector<64x32xbf16>, vector<8x32xf32> -> vector<8x32xf32>
    %c0_9 = arith.constant 0 : index
    %c0_10 = arith.constant 0 : index
    %11 = vector.load %arg6[%c0_9, %c0_10] : memref<1x32xf32, #tpu.memory_space<vmem>>, vector<1x32xf32>
    %12 = vector.broadcast %11 : vector<1x32xf32> to vector<8x32xf32>
    %13 = arith.addf %10, %12 : vector<8x32xf32>
    %cst_11 = arith.constant 0.000000e+00 : f32
    %14 = vector.broadcast %cst_11 : f32 to vector<8x32xf32>
    %15 = arith.maximumf %13, %14 : vector<8x32xf32>
    %16 = arith.truncf %15 : vector<8x32xf32> to vector<8x32xbf16>
    %c0_12 = arith.constant 0 : index
    %c0_13 = arith.constant 0 : index
    %17 = vector.load %arg7[%c0_12, %c0_13] : memref<32x4xbf16, #tpu.memory_space<vmem>>, vector<32x4xbf16>
    %cst_14 = arith.constant dense<0.000000e+00> : vector<8x4xf32>
    %18 = tpu.matmul %16, %17, %cst_14 {dimension_numbers = #tpu.dot_dimension_numbers<[1], [0], [0], [1], [0, 0, 1, 1], [], []>} : vector<8x32xbf16>, vector<32x4xbf16>, vector<8x4xf32> -> vector<8x4xf32>
    %c0_15 = arith.constant 0 : index
    %c0_16 = arith.constant 0 : index
    %19 = vector.load %arg8[%c0_15, %c0_16] : memref<1x4xf32, #tpu.memory_space<vmem>>, vector<1x4xf32>
    %20 = vector.broadcast %19 : vector<1x4xf32> to vector<8x4xf32>
    %21 = arith.addf %18, %20 : vector<8x4xf32>
    %c0_17 = arith.constant 0 : index
    %c0_18 = arith.constant 0 : index
    %22 = vector.load %arg9[%c0_17, %c0_18] : memref<8x4xf32, #tpu.memory_space<vmem>>, vector<8x4xf32>
    tpu.vector_store %arg9[%c0_17, %c0_18], %21 {strides = array<i32>} : memref<8x4xf32, #tpu.memory_space<vmem>>, vector<8x4xf32>,
    return
  }
  func.func @transform_0(%arg0: i32, %arg1: memref<1xi32, #tpu.memory_space<smem>>) -> (i32, i32) {
    %c0_i32 = arith.constant 0 : i32
    %c0_i32_0 = arith.constant 0 : i32
    return %arg0, %c0_i32 : i32, i32
  }
  func.func @transform_1(%arg0: i32, %arg1: memref<1xi32, #tpu.memory_space<smem>>) -> (i32, i32) {
    %c0_i32 = arith.constant 0 : i32
    %c0_i32_0 = arith.constant 0 : i32
    %c0_i32_1 = arith.constant 0 : i32
    return %c0_i32, %c0_i32_0 : i32, i32
  }
  func.func @transform_2(%arg0: i32, %arg1: memref<1xi32, #tpu.memory_space<smem>>) -> (i32, i32) {
    %c0_i32 = arith.constant 0 : i32
    %c0_i32_0 = arith.constant 0 : i32
    %c0_i32_1 = arith.constant 0 : i32
    return %c0_i32, %c0_i32_0 : i32, i32
  }
  func.func @transform_3(%arg0: i32, %arg1: memref<1xi32, #tpu.memory_space<smem>>) -> (i32, i32) {
    %c0_i32 = arith.constant 0 : i32
    %c0_i32_0 = arith.constant 0 : i32
    %c0_i32_1 = arith.constant 0 : i32
    return %c0_i32, %c0_i32_0 : i32, i32
  }
  func.func @transform_4(%arg0: i32, %arg1: memref<1xi32, #tpu.memory_space<smem>>) -> (i32, i32) {
    %c0_i32 = arith.constant 0 : i32
    %c0_i32_0 = arith.constant 0 : i32
    %c0_i32_1 = arith.constant 0 : i32
    return %c0_i32, %c0_i32_0 : i32, i32
  }
  func.func @transform_5(%arg0: i32, %arg1: memref<1xi32, #tpu.memory_space<smem>>) -> (i32, i32) {
    %c0_i32 = arith.constant 0 : i32
    %c0_i32_0 = arith.constant 0 : i32
    %c0_i32_1 = arith.constant 0 : i32
    return %c0_i32, %c0_i32_0 : i32, i32
  }
  func.func @transform_6(%arg0: i32, %arg1: memref<1xi32, #tpu.memory_space<smem>>) -> (i32, i32) {
    %c0_i32 = arith.constant 0 : i32
    %c0_i32_0 = arith.constant 0 : i32
    %c0_i32_1 = arith.constant 0 : i32
    return %c0_i32, %c0_i32_0 : i32, i32
  }
  func.func @transform_7(%arg0: i32, %arg1: memref<1xi32, #tpu.memory_space<smem>>) -> (i32, i32) {
    %c0_i32 = arith.constant 0 : i32
    %c0_i32_0 = arith.constant 0 : i32
    return %arg0, %c0_i32 : i32, i32
  }
}

</mosaic_0001>

<bundles_post_ra>
// kernel: tpu_custom_call.1
= control target key start
LH: loop header
LB: loop body
LE: loop exit
PB: predicated region body
PF: predicated region fallthrough
CT: control target
= control target key end

     0   :  { %vm42_vm0 = vcmask 130048   ;;  %vm97_vm1 = vcmask 523264   ;;  %vm136_vm2 = vcmask 261120   ;;  %vm153_vm3 = vcmask 31744   ;;  %s281_s0 = inlined_call_operand.<no memory space> [shape: s32[1], index: 0, kind: input, shape index: {}]   ;;  %s282_s2 = inlined_call_operand.vmem [shape: bf16[16,64], index: 2, kind: input, shape index: {}]   ;;  %s283_s1 = inlined_call_operand.vmem [shape: bf16[8,16], index: 1, kind: input, shape index: {}]   ;;  %s284_s4 = inlined_call_operand.vmem [shape: bf16[64,32], index: 4, kind: input, shape index: {}]   ;;  %s285_s3 = inlined_call_operand.vmem [shape: f32[1,64], index: 3, kind: input, shape index: {}]   ;;  %s286_s5 = inlined_call_operand.vmem [shape: f32[1,32], index: 5, kind: input, shape index: {}]   ;;  %s287_s7 = inlined_call_operand.vmem [shape: f32[1,4], index: 7, kind: input, shape index: {}]   ;;  %s288_s6 = inlined_call_operand.vmem [shape: bf16[32,4], index: 6, kind: input, shape index: {}]   ;;  %s289_s8 = inlined_call_operand.vmem [shape: f32[8,4], index: 8, kind: output, shape index: {}]  }
   0x1   :  { %v190_v0 = vld [vmem:[%s282_s2] sm:$0xff]  ;;  %v194_v1 = vld [vmem:[%s284_s4 + $0x18] sm:$0xff]  ;;  %v193_v3 = vld [vmem:[%s284_s4 + $0x10] sm:$0xff] }
   0x2   :  { %53 = vmatpush.bf16.msra.mxu0 %v190_v0  ;;  %v29_v2 = vld [vmem:[%s283_s1] sm:$0xf]  ;;  %105 = vmatpush.bf16.msra.mxu1 %v194_v1  ;;  %v192_v4 = vld [vmem:[%s284_s4 + $0x8] sm:$0xff] }
   0x3   :  { %v191_v5 = vld [vmem:[%s284_s4] sm:$0xff]  ;;  %v196_v12 = vld [vmem:[%s288_s6 + $0x8] sm:$0xff] }
   0x4   :  { %v197_v6 = vld [vmem:[%s285_s3] ss:$0 sm:$0xff]  ;;  %146 = vmatpush.bf16.msra.mxu2 %v196_v12 }
   0x5   :  { %163 = vmatmul.msk.bf16.vlgmr.msra.gmra.mxu0 %vm42_vm0, %v29_v2  ;;  %v195_v13 = vld [vmem:[%s288_s6] sm:$0xff] }
   0x6   :  { %106 = vmatpush.bf16.msra.mxu1 %v193_v3  ;;  %v198_v14 = vld [vmem:[%s286_s5] ss:$0 sm:$0xff] }
   0x7   :  { %v199_v20 = vld [vmem:[%s287_s7] ss:$0 sm:$0xff] }
   0x8   :  { %147 = vmatpush.bf16.msra.mxu2 %v195_v13 }
   0xa   :  { %107 = vmatpush.bf16.msra.mxu1 %v192_v4 }
   0xe   :  { %108 = vmatpush.bf16.msra.mxu1 %v191_v5 }
  0x82   :  { %v55_v7 = vpop.f32.mrf.mxu0 }
  0x83   :  { %v56_v8 = vadd.f32 %v197_v6, %v55_v7 }
  0x85   :  { %v59_v9 = vmax.f32 %v56_v8, 0.0 }
  0x87   :  { %v60_v10 = vpack.c.bf16 %v59_v9, %v59_v9 }
  0x89   :  { %180 = vmatmul.msk.bf16.vlgmr.msra.gmra.mxu1 %vm97_vm1, %v60_v10 }
  0x8a   :  { %v57_v11 = vpop.f32.mrf.mxu0 }
 0x106   :  { %v110_v15 = vpop.f32.mrf.mxu1 }
 0x107   :  { %v111_v16 = vadd.f32 %v198_v14, %v110_v15 }
 0x109   :  { %v114_v17 = vmax.f32 %v111_v16, 0.0 }
 0x10b   :  { %v115_v18 = vpack.c.bf16 %v114_v17, %v114_v17 }
 0x10d   :  { %189 = vmatmul.msk.bf16.vlgmr.msra.gmra.mxu2 %vm136_vm2, %v115_v18 }
 0x10e   :  { %v112_v19 = vpop.f32.mrf.mxu1 }
 0x190   :  { %v149_v21 = vpop.f32.mrf.mxu2 }
 0x191   :  { %v150_v22 = vadd.f32 %v199_v20, %v149_v21 }
 0x193   :  { %154 = vst.msk [vmem:[%s289_s8] sm:$0xff] %vm153_vm3, %v150_v22 }
 0x198   :  { %v151_v23 = vpop.f32.mrf.mxu2 }

</bundles_post_ra>
